<compile_context>
chip_gen: v7x
topology: tpu7x:2x2x1
jax: 0.10.0
libtpu: 0.0.40
codegen_flags: <defaults>
</compile_context>

<pallas_src>
import functools
import math

import jax
import jax.numpy as jnp
from jax.experimental import pallas as pl
from jax.experimental.pallas import tpu as pltpu

_LANE = 128


# --------------------------------------------------------------------------- #
# Hardware-aware sizing helpers
# --------------------------------------------------------------------------- #
def _vmem_capacity_bytes() -> int:
    """Physical VMEM per TensorCore (128 MiB v5e/v6e, 64 MiB v7x)."""
    try:
        return int(pltpu.get_tpu_info().vmem_capacity_bytes)
    except Exception:
        return 128 << 20


def _sublane(itemsize: int) -> int:
    # f32 packs 8 rows / sublane tile; bf16/fp16 pack 16; int8/fp8 pack 32.
    if itemsize >= 4:
        return 8
    if itemsize == 2:
        return 16
    return 32


def _choose_tile_rows(rows: int, bytes_per_row_live: int, itemsize: int,
                      vmem_cap: int) -> int:
    """Largest legal row-tile whose accounted live VMEM fits the budget.

    `bytes_per_row_live` must already count every double-buffered block and
    the per-row temporaries the kernel body materializes.
    """
    # ~7/16 of physical VMEM: 56 MiB on v5e/v6e, 28 MiB on v7x. Leaves room
    # for Mosaic scratch and compiler temporaries under the vmem limit.
    budget = (7 * vmem_cap) // 16
    sub = _sublane(itemsize)
    if rows <= sub:
        return rows  # block == full array dim is always legal
    tile = min(rows, 2048, max(sub, budget // max(1, bytes_per_row_live)))
    # Prefer >= 4 grid steps (keeps the DMA pipeline full) once tiles are
    # already past the ~512-row roofline knee.
    if tile > 512 and rows // tile < 4:
        tile = max(512, -(-rows // 4))
    return max(sub, (tile // sub) * sub)


def _vmem_limit(live_bytes: int, vmem_cap: int) -> int:
    # 1.5x the accounted live bytes for headroom, clamped to [32 MiB, 7/8 cap]
    # (<= 56 MiB on v7x, <= 112 MiB on v5e/v6e).
    hi = (7 * vmem_cap) // 8
    return int(min(hi, max(32 << 20, (3 * live_bytes) // 2)))


# --------------------------------------------------------------------------- #
# Kernels
# --------------------------------------------------------------------------- #
def _add_table_kernel(x_ref, pe_ref, o_ref):
    # x_ref / o_ref: (B, TR, C); pe_ref: (TR, C). Pure broadcast add.
    o_ref[...] = x_ref[...] + pe_ref[...][None, :, :]


def _sin_pe_kernel(x_ref, o_ref, *, d_model, acc_dtype):
    # x_ref / o_ref: (B, TILE_L, D); grid axis 0 walks L-tiles. D % 128 == 0.
    _, TL, D = x_ref.shape

    # ---- D-only rows, computed once per tile: shape (1, D) -----------------
    j = jax.lax.broadcasted_iota(jnp.int32, (1, D), 1)
    pair = ((j >> 1) << 1).astype(jnp.float32)                 # 2 * (j // 2)
    freq_row = jnp.exp(pair * (-math.log(10000.0) / d_model))  # (1, D)
    # even column -> sin(x); odd column -> sin(x + pi/2) == cos(x)
    phase_row = jnp.where((j & 1) == 1,
                          jnp.float32(math.pi / 2.0),
                          jnp.float32(0.0))                    # (1, D)

    # ---- positions for this tile: shape (TILE_L, 1) -------------------------
    # Exact for L < 2^24 (f32 position math); far beyond practical seq lens.
    l_start = (pl.program_id(0) * TL).astype(jnp.float32)
    t = jax.lax.broadcasted_iota(jnp.float32, (TL, 1), 0) + l_start

    # Single transcendental per (l, d) element, amortized over B.
    pe = jnp.sin(t * freq_row + phase_row).astype(acc_dtype)   # (TILE_L, D)

    o_ref[...] = (x_ref[...].astype(acc_dtype) + pe[None, :, :]).astype(o_ref.dtype)


# --------------------------------------------------------------------------- #
# Wrapper
# --------------------------------------------------------------------------- #
def _pe_table(L: int, D: int, dtype) -> jax.Array:
    """(L, D) sinusoidal table, computed exactly as the PyTorch module does."""
    t = jnp.arange(L, dtype=jnp.float32)[:, None]
    f_j = jnp.exp(jnp.arange(0, D, 2, dtype=jnp.float32) * (-math.log(10000.0) / D))
    ang = t * f_j
    pe = jnp.zeros((L, D), jnp.float32)
    pe = pe.at[:, 0::2].set(jnp.sin(ang))
    pe = pe.at[:, 1::2].set(jnp.cos(ang))
    return pe.astype(dtype)


def positional_encoding(x: jax.Array, tile_rows: int | None = None) -> jax.Array:
    """x: (B, L, d_model) float array. Returns x + sinusoidal positional encoding.

    Note: input buffer is donated to the output (input_output_aliases={0: 0});
    do not read `x` after this call.
    """
    B, L, D = x.shape
    dtype = x.dtype
    itemsize = jnp.dtype(dtype).itemsize
    vmem_cap = _vmem_capacity_bytes()

    # Small batch: per-element sin amortizes poorly -> precomputed table.
    # Non-lane-dense D: table path lets us fold to a 128-wide last dim.
    use_table = (B <= 4) or (D % _LANE != 0)

    if use_table:
        if D % _LANE != 0 and (L * D) % _LANE == 0:
            R, C = (L * D) // _LANE, _LANE        # lane-dense folded layout
        else:
            R, C = L, D                           # D already lane-dense (or full-dim block)
        pe = _pe_table(L, D, dtype).reshape(R, C)
        x2 = x.reshape(B, R, C)

        # Live bytes per tile row: x-in + out (B rows each, double-buffered)
        # plus the pe block (1 row, double-buffered).
        bytes_per_row = (2 * 2 * B + 2) * C * itemsize
        tr = tile_rows if tile_rows is not None else _choose_tile_rows(
            R, bytes_per_row, itemsize, vmem_cap)
        grid = (pl.cdiv(R, tr),)

        x_spec = pl.BlockSpec((B, tr, C), lambda r: (0, r, 0))
        pe_spec = pl.BlockSpec((tr, C), lambda r: (r, 0))
        live = bytes_per_row * tr

        out = pl.pallas_call(
            _add_table_kernel,
            out_shape=jax.ShapeDtypeStruct((B, R, C), dtype),
            grid=grid,
            in_specs=[x_spec, pe_spec],
            out_specs=x_spec,
            input_output_aliases={0: 0},
            compiler_params=pltpu.CompilerParams(
                dimension_semantics=("parallel",),
                vmem_limit_bytes=_vmem_limit(live, vmem_cap),
            ),
        )(x2, pe)
        return out.reshape(B, L, D)

    # ---- in-kernel sin path (B >= 5, D % 128 == 0) --------------------------
    acc_dtype = jnp.bfloat16 if dtype == jnp.bfloat16 else jnp.float32
    acc_size = jnp.dtype(acc_dtype).itemsize
    # Double-buffered in+out blocks + the upcast of x + the (TL, D) PE temp.
    bytes_per_row = (4 * B * D * itemsize) + (B * D * acc_size) + (D * 4)
    tl = tile_rows if tile_rows is not None else _choose_tile_rows(
        L, bytes_per_row, itemsize, vmem_cap)
    grid = (pl.cdiv(L, tl),)
    spec = pl.BlockSpec((B, tl, D), lambda l: (0, l, 0))
    live = bytes_per_row * tl

    return pl.pallas_call(
        functools.partial(_sin_pe_kernel, d_model=D, acc_dtype=acc_dtype),
        out_shape=jax.ShapeDtypeStruct((B, L, D), dtype),
        grid=grid,
        in_specs=[spec],
        out_specs=spec,
        input_output_aliases={0: 0},
        compiler_params=pltpu.CompilerParams(
            dimension_semantics=("parallel",),
            vmem_limit_bytes=_vmem_limit(live, vmem_cap),
        ),
    )(x)


# --------------------------------------------------------------------------- #
# Reference + tests
# --------------------------------------------------------------------------- #
def _reference(x: jnp.ndarray) -> jnp.ndarray:
    # Pure-JAX reference replicating the PyTorch forward exactly.
    B, L, D = x.shape
    t = jnp.arange(L, dtype=jnp.float32)[:, None]
    f_j = jnp.exp(jnp.arange(0, D, 2, dtype=jnp.float32) * (-math.log(10000.0) / D))
    pe = jnp.zeros((L, D), dtype=jnp.float32)
    pe = pe.at[:, 0::2].set(jnp.sin(t * f_j))
    pe = pe.at[:, 1::2].set(jnp.cos(t * f_j))
    return (x.astype(jnp.float32) + pe).astype(x.dtype)


if __name__ == "__main__":
    key = jax.random.PRNGKey(0)
    k1, k2, k3 = jax.random.split(key, 3)

    # 1) Module-convention shape (batch=2, seq=8, hidden=32): small-B table
    #    path, D folded into a lane-dense (R=2, C=128) layout.
    x1 = jax.random.normal(k1, (2, 8, 32), dtype=jnp.float32)
    ref1 = _reference(x1)                  # compute BEFORE the call (x1 is donated)
    out1 = jax.block_until_ready(positional_encoding(x1))
    assert out1.shape == (2, 8, 32)
    assert jnp.allclose(out1, ref1, atol=1e-5, rtol=1e-5), "mismatch (table path)"

    # 2) Longer sequence + forced small tile: multi-step grid over the folded
    #    lane-dense layout (R=16, C=128, two tiles of 8 rows).
    x2 = jax.random.normal(k2, (2, 64, 32), dtype=jnp.float32)
    ref2 = _reference(x2)
    out2 = jax.block_until_ready(positional_encoding(x2, tile_rows=8))
    assert jnp.allclose(out2, ref2, atol=1e-5, rtol=1e-5), "mismatch (table path, tiled)"

    # 3) Larger batch with lane-dense d_model: in-kernel single-sin path,
    #    4 grid steps, exercising the per-tile position offset.
    x3 = jax.random.normal(k3, (8, 32, 128), dtype=jnp.float32)
    ref3 = _reference(x3)
    out3 = jax.block_until_ready(positional_encoding(x3, tile_rows=8))
    assert jnp.allclose(out3, ref3, atol=1e-5, rtol=1e-5), "mismatch (sin path)"

    print("KERNEL_OK")
</pallas_src>

<mosaic_0001>
module attributes {stable_mosaic.version = 11 : i64} {
  func.func @_add_table_kernel(%arg0: i32, %arg1: memref<2x2x128xf32, #tpu.memory_space<vmem>>, %arg2: memref<2x128xf32, #tpu.memory_space<vmem>>, %arg3: memref<2x2x128xf32, #tpu.memory_space<vmem>>) attributes {dimension_semantics = [#tpu.dimension_semantics<parallel>], iteration_bounds = array<i64: 1>, scalar_prefetch = 0 : i64, scratch_operands = 0 : i64, tpu.core_type = #tpu.core_type<tc>, window_params = [{transform_indices = @transform_0, window_bounds = array<i64: 2, 2, 128>}, {transform_indices = @transform_1, window_bounds = array<i64: 2, 128>}, {transform_indices = @transform_2, window_bounds = array<i64: 2, 2, 128>}]} {
    %c0 = arith.constant 0 : index
    %c0_0 = arith.constant 0 : index
    %c0_1 = arith.constant 0 : index
    %0 = vector.load %arg1[%c0, %c0_0, %c0_1] : memref<2x2x128xf32, #tpu.memory_space<vmem>>, vector<2x2x128xf32>
    %c0_2 = arith.constant 0 : index
    %c0_3 = arith.constant 0 : index
    %1 = vector.load %arg2[%c0_2, %c0_3] : memref<2x128xf32, #tpu.memory_space<vmem>>, vector<2x128xf32>
    %2 = vector.shape_cast %1 : vector<2x128xf32> to vector<1x2x128xf32>
    %3 = vector.broadcast %2 : vector<1x2x128xf32> to vector<2x2x128xf32>
    %4 = arith.addf %0, %3 : vector<2x2x128xf32>
    %c0_4 = arith.constant 0 : index
    %c0_5 = arith.constant 0 : index
    %c0_6 = arith.constant 0 : index
    %5 = vector.load %arg3[%c0_4, %c0_5, %c0_6] : memref<2x2x128xf32, #tpu.memory_space<vmem>>, vector<2x2x128xf32>
    tpu.vector_store %arg3[%c0_4, %c0_5, %c0_6], %4 {strides = array<i32>} : memref<2x2x128xf32, #tpu.memory_space<vmem>>, vector<2x2x128xf32>,
    return
  }
  func.func @transform_0(%arg0: i32) -> (i32, i32, i32) {
    %c0_i32 = arith.constant 0 : i32
    %c0_i32_0 = arith.constant 0 : i32
    %c0_i32_1 = arith.constant 0 : i32
    return %c0_i32, %arg0, %c0_i32_0 : i32, i32, i32
  }
  func.func @transform_1(%arg0: i32) -> (i32, i32) {
    %c0_i32 = arith.constant 0 : i32
    %c0_i32_0 = arith.constant 0 : i32
    return %arg0, %c0_i32 : i32, i32
  }
  func.func @transform_2(%arg0: i32) -> (i32, i32, i32) {
    %c0_i32 = arith.constant 0 : i32
    %c0_i32_0 = arith.constant 0 : i32
    %c0_i32_1 = arith.constant 0 : i32
    return %c0_i32, %arg0, %c0_i32_0 : i32, i32, i32
  }
}

</mosaic_0001>

<bundles_post_ra>
// kernel: tpu_custom_call.1
= control target key start
LH: loop header
LB: loop body
LE: loop exit
PB: predicated region body
PF: predicated region fallthrough
CT: control target
= control target key end

     0   :  { %7 = vsyncpa [#allocation3], 0  ;;  %s154_s0 = inlined_call_operand.hbm [shape: f32[2,2,128], index: 0, kind: input, shape index: {}, may-alias: {0,2}]   ;;  %s155_s1 = inlined_call_operand.vmem [shape: f32[2,128], index: 1, kind: input, shape index: {}]   ;;  %s156_s2 = inlined_call_operand.hbm [shape: f32[2,2,128], index: 2, kind: output, shape index: {}, may-alias: {0,2}]  }
   0x1   :  { %8 = vsyncpa [#allocation4], 0  ;;  %s102_s9 = smov [#allocation2]   ;;  %s54_s13 = scalar_lea.hbm %s154_s0, 64 }
   0x2   :  { %s14_s10 = sshll.u32 %s102_s9, 4  ;;  %p55_p0 = scmp.ne.s32.totalorder %s154_s0, %s54_s13  ;;  %s15_s10 = int_to_ptr.vmem [resolvable:$true] %s14_s10 }
   0x3   :  { %p58_p1 = scmp.lt.u32.totalorder %s54_s13, %s154_s0 }
   0x5   :  { %p60_p2 = pnand %p58_p1, %p55_p0 }
   0x7   :  { %63 = shalt.err (!%p60_p2)
}
   0x8   :  { %s64_s18 = scalar_lea.vmem %s15_s10, 64  ;;  %p69_p4 = scmp.lt.s32.totalorder %s15_s10, %s15_s10 }
   0x9   :  { %p65_p3 = scmp.ne.s32.totalorder %s15_s10, %s64_s18  ;;  %p70_p5 = scmp.lt.s32.totalorder %s64_s18, %s64_s18 }
   0xb   :  { %p71_p6 = por %p70_p5, %p69_p4 }
   0xd   :  { %p72_p7 = pnand %p71_p6, %p65_p3 }
   0xf   :  { %75 = shalt.err (!%p72_p7)
}
  0x10   :  { %s103_s19 = smov 32   ;;  %s104_s20 = smov 2  }
  0x11   :  { %20 = dma.hbm_to_vmem [thread:$0]  %s154_s0, 64, %s15_s10, [#allocation3], %s103_s19, %s103_s19, %s104_s20  }
  0x12   :  { %98 = dma.done.wait [#allocation3], 64  }
  0x13   :  { %99 = vsyncadd [#allocation3], 4294967232  ;;  %s105_s23 = smov [#allocation5]   ;;  %v26_v0 = vld [vmem:[#allocation2] sm:$0x3] }
  0x14   :  { %s38_s24 = sshll.u32 %s105_s23, 4  ;;  %v28_v1 = vld [vmem:[%s155_s1] sm:$0x3]  ;;  %v27_v2 = vld [vmem:[#allocation2 + $0x2] sm:$0x3]  ;;  %s39_s24 = int_to_ptr.vmem [resolvable:$true] %s38_s24 }
  0x15   :  { %v29_v3 = vadd.f32 %v28_v1, %v26_v0  ;;  %v30_v4 = vadd.f32 %v28_v1, %v27_v2  ;;  %s76_s27 = scalar_lea.vmem %s39_s24, 64  ;;  %p81_p9 = scmp.lt.s32.totalorder %s39_s24, %s39_s24 }
  0x16   :  { %p77_p8 = scmp.ne.s32.totalorder %s39_s24, %s76_s27  ;;  %p82_p10 = scmp.lt.s32.totalorder %s76_s27, %s76_s27 }
  0x17   :  { %31 = vst [vmem:[#allocation5] sm:$0x3] %v29_v3  ;;  %32 = vst [vmem:[#allocation5 + $0x2] sm:$0x3] %v30_v4 }
  0x18   :  { %p83_p11 = por %p82_p10, %p81_p9 }
  0x1a   :  { %p84_p12 = pnand %p83_p11, %p77_p8 }
  0x1c   :  { %87 = shalt.err (!%p84_p12)
}
  0x1d   :  { %s88_s29 = scalar_lea.hbm %s156_s2, 64 }
  0x1e   :  { %p89_p13 = scmp.ne.s32.totalorder %s156_s2, %s88_s29  ;;  %p92_p0 = scmp.lt.u32.totalorder %s88_s29, %s156_s2 }
  0x20   :  { %p94_p1 = pnand %p92_p0, %p89_p13 }
  0x22   :  { %97 = shalt.err (!%p94_p1)
}
  0x23   :  { %44 = dma.vmem_to_hbm [thread:$0]  %s39_s24, 64, %s156_s2, [#allocation4], %s103_s19, %s103_s19, %s104_s20  }
  0x24   :  { %100 = dma.done.wait [#allocation4], 64  }
  0x25   :  { %101 = vsyncadd [#allocation4], 4294967232 }
  0x26   :  { %48 = vsyncpa [#allocation3], 1 }
  0x27   :  { %49 = vsyncpa [#allocation4], 1 }

</bundles_post_ra>
